<compile_context>
chip_gen: v7x
topology: tpu7x:2x2x1
jax: 0.10.0
libtpu: 0.0.40
codegen_flags: <defaults>
</compile_context>

<pallas_src>
import functools

import jax
import jax.numpy as jnp
from jax import lax
from jax.experimental import pallas as pl
from jax.experimental.pallas import tpu as pltpu


def _round_up(x, m):
    return (x + m - 1) // m * m


def _vmem_cap_bytes():
    try:
        return int(pltpu.get_tpu_info().vmem_capacity_bytes)
    except Exception:
        return 64 * 1024 * 1024  # conservative: v7x physical VMEM per TC


# ---------------------------------------------------------------------------
# Fused stride-1 kernel: direct conv from a VMEM-resident, width-im2col'd,
# spatially-flattened padded image slab.  Grid = (batch, L-tiles).
# ---------------------------------------------------------------------------
def _make_fused_kernel(kh, ow8, tl):
    def kernel(x_ref, w_ref, b_ref, a_ref, o_ref):
        # x_ref: (1, R, K)        slab, K = kw*cin; resident across the t axis.
        # w_ref: (kh, K, Cout_p)  weight; slice i is kernel-row i's (K, Cout_p).
        # b_ref: (1, Cout_p)      bias (zero-padded to the 128-lane tile).
        # a_ref: (1, 1)           PReLU alpha (SMEM scalar).
        # o_ref: (1, TL, Cout_p)  lane-dense output tile.
        t = pl.program_id(1)
        base = pl.multiple_of(t * tl, 8)
        cout_p = o_ref.shape[-1]
        acc = jnp.zeros((tl, cout_p), jnp.float32)
        for i in range(kh):                       # kh MXU matmuls, K = kw*cin deep
            off = pl.multiple_of(base + i * ow8, 8)
            acc += jnp.dot(x_ref[0, pl.ds(off, tl), :], w_ref[i],
                           preferred_element_type=jnp.float32)
        acc = acc + b_ref[...]
        alpha = a_ref[0, 0]
        # TODO(synk): emit bfloat16 here (halves the dominant output HBM stream)
        # once the consumer tolerates relaxed precision.
        o_ref[0] = jnp.where(acc > 0, acc, alpha * acc).astype(o_ref.dtype)
    return kernel


def _conv_prelu_fused_s1(x, weight, bias, alpha, padding, tl_rows=256):
    """stride == 1 path (fused direct convolution)."""
    n, cin, h, w = x.shape
    cout, _, kh, kw = weight.shape
    hp = h + 2 * padding
    oh = hp - kh + 1
    ow = w + 2 * padding - kw + 1
    ow8 = _round_up(ow, 8)                 # 8-aligned row stride -> aligned i*ow8 offsets
    k = kw * cin                           # contraction depth per kernel row
    cout_p = _round_up(cout, 128)          # lane-dense output / weight columns

    l = oh * ow8                           # output rows (dense when ow8 == ow)
    tl = min(tl_rows, _round_up(l, 8))     # L-tile (<= 256 rows -> 32-vreg acc)
    l_pad = _round_up(l, tl)
    r = l_pad + (kh - 1) * ow8             # slab rows incl. L round-up padding

    # NCHW -> NHWC, conv zero-pad (+ right-pad for ow8 junk cols), width-only
    # im2col (concat kw shifted views along channels), flatten spatial dims.
    # TODO(synk): these small XLA prep passes could be folded into the kernel
    # with a pl.ANY HBM ref + per-row DMA gather for very large images.
    xh = jnp.transpose(x, (0, 2, 3, 1))
    w_right = ow8 + kw - 1 - (w + padding)
    xh = jnp.pad(xh, ((0, 0), (padding, padding), (padding, w_right), (0, 0)))
    slab = jnp.concatenate([xh[:, :, j:j + ow8, :] for j in range(kw)], axis=-1)
    slab = slab.reshape(n, hp * ow8, k)
    slab = jnp.pad(slab, ((0, 0), (0, r - hp * ow8), (0, 0)))

    # (Cout, Cin, KH, KW) -> (KH, KW*Cin, Cout_p), K order matches the slab.
    wr = jnp.transpose(weight, (2, 3, 1, 0)).reshape(kh, k, cout)
    wr = jnp.pad(wr, ((0, 0), (0, 0), (0, cout_p - cout)))
    b2 = jnp.pad(bias.reshape(1, cout), ((0, 0), (0, cout_p - cout)))
    a2 = jnp.asarray(alpha, jnp.float32).reshape(1, 1)

    flops = 2 * n * oh * ow * kh * kw * cin * cout
    bytes_accessed = 4 * (slab.size + wr.size + b2.size + n * l_pad * cout_p)
    # Per-step VMEM estimate (lane/sublane padded): resident slab (x2 buffers),
    # weights, bias, double-buffered output tile, f32 accumulator.
    vmem_est = 4 * (2 * r * _round_up(k, 128)
                    + 2 * kh * _round_up(k, 8) * cout_p
                    + 2 * cout_p
                    + 2 * tl * cout_p
                    + tl * cout_p)
    cap = _vmem_cap_bytes()
    vmem_limit = int(min(max(4 * vmem_est, 16 * 1024 * 1024),
                         cap - 4 * 1024 * 1024))
    # TODO(synk): for very large images the resident slab itself could exceed
    # VMEM; windowing the slab rows per L-tile (manual DMA) would lift that.

    out = pl.pallas_call(
        _make_fused_kernel(kh, ow8, tl),
        out_shape=jax.ShapeDtypeStruct((n, l_pad, cout_p), jnp.float32),
        grid_spec=pltpu.PrefetchScalarGridSpec(
            num_scalar_prefetch=0,
            grid=(n, l_pad // tl),
            in_specs=[
                pl.BlockSpec((1, r, k), lambda b, t: (b, 0, 0)),       # slab stays put over t
                pl.BlockSpec((kh, k, cout_p), lambda b, t: (0, 0, 0)),
                pl.BlockSpec((1, cout_p), lambda b, t: (0, 0)),
                pl.BlockSpec(memory_space=pltpu.SMEM),
            ],
            out_specs=pl.BlockSpec((1, tl, cout_p), lambda b, t: (b, t, 0)),
        ),
        compiler_params=pltpu.CompilerParams(
            dimension_semantics=("parallel", "parallel"),
            vmem_limit_bytes=vmem_limit),
        cost_estimate=pl.CostEstimate(
            flops=flops, transcendentals=0, bytes_accessed=bytes_accessed),
    )(slab, wr, b2, a2)

    # Un-pad (L round-up rows, ow8 junk columns, padded Cout lanes) -> NCHW.
    # TODO(synk): downstream consumers could take NHWC directly and skip this
    # final HBM transpose / re-read of the lane-padded tensor.
    out = out[:, :l, :cout].reshape(n, oh, ow8, cout)[:, :, :ow, :]
    return jnp.transpose(out, (0, 3, 1, 2))


# ---------------------------------------------------------------------------
# Fallback for stride != 1: im2col + fused matmul/bias/PReLU kernel.
# K (= cin*kh*kw) is NOT padded to 128 in HBM; Cout padded to 128, 512-row tiles.
# ---------------------------------------------------------------------------
def _matmul_bias_prelu_kernel(p_ref, w_ref, b_ref, a_ref, o_ref):
    acc = jnp.dot(p_ref[...], w_ref[...], preferred_element_type=jnp.float32)
    acc = acc + b_ref[...]
    alpha = a_ref[0, 0]
    o_ref[...] = jnp.where(acc > 0, acc, alpha * acc).astype(o_ref.dtype)


def _im2col_nchw(x, kh, kw, stride, padding):
    n, c, h, w = x.shape
    xp = jnp.pad(x, ((0, 0), (0, 0), (padding, padding), (padding, padding)))
    oh = (h + 2 * padding - kh) // stride + 1
    ow = (w + 2 * padding - kw) // stride + 1
    cols = []
    for i in range(kh):
        for j in range(kw):
            cols.append(xp[:, :, i:i + stride * oh:stride, j:j + stride * ow:stride])
    patches = jnp.stack(cols, axis=2)                       # (N, C, kh*kw, OH, OW)
    patches = patches.transpose(0, 3, 4, 1, 2).reshape(n * oh * ow, c * kh * kw)
    return patches, oh, ow


def _conv_prelu_im2col(x, weight, bias, alpha, stride, padding, tm=512):
    # TODO(synk): strided convs still read KH*KW x more HBM bytes than needed;
    # extend the fused slab kernel with strided row indexing to cover stride>1.
    n, cin, _, _ = x.shape
    cout, _, kh, kw = weight.shape
    patches, oh, ow = _im2col_nchw(x, kh, kw, stride, padding)   # (M, K)
    m, k = patches.shape
    cout_p = _round_up(cout, 128)
    tm = min(tm, _round_up(m, 8))
    m_pad = _round_up(m, tm)

    patches = jnp.pad(patches, ((0, m_pad - m), (0, 0)))         # K not padded
    w2d = jnp.pad(weight.reshape(cout, k).T, ((0, 0), (0, cout_p - cout)))
    b2d = jnp.pad(bias.reshape(1, cout), ((0, 0), (0, cout_p - cout)))
    a2d = jnp.asarray(alpha, jnp.float32).reshape(1, 1)

    vmem_est = 4 * (2 * tm * _round_up(k, 128)
                    + 2 * _round_up(k, 8) * cout_p
                    + 2 * tm * cout_p)
    cap = _vmem_cap_bytes()
    vmem_limit = int(min(max(4 * vmem_est, 16 * 1024 * 1024),
                         cap - 4 * 1024 * 1024))

    out = pl.pallas_call(
        _matmul_bias_prelu_kernel,
        out_shape=jax.ShapeDtypeStruct((m_pad, cout_p), jnp.float32),
        grid_spec=pltpu.PrefetchScalarGridSpec(
            num_scalar_prefetch=0,
            grid=(m_pad // tm,),
            in_specs=[
                pl.BlockSpec((tm, k), lambda i: (i, 0)),
                pl.BlockSpec((k, cout_p), lambda i: (0, 0)),
                pl.BlockSpec((1, cout_p), lambda i: (0, 0)),
                pl.BlockSpec(memory_space=pltpu.SMEM),
            ],
            out_specs=pl.BlockSpec((tm, cout_p), lambda i: (i, 0)),
        ),
        compiler_params=pltpu.CompilerParams(
            dimension_semantics=("parallel",),
            vmem_limit_bytes=vmem_limit),
        cost_estimate=pl.CostEstimate(
            flops=2 * m * k * cout, transcendentals=0,
            bytes_accessed=4 * (m_pad * k + k * cout_p + m_pad * cout_p)),
    )(patches, w2d, b2d, a2d)

    out = out[:m, :cout]
    return out.reshape(n, oh, ow, cout).transpose(0, 3, 1, 2)


@functools.partial(jax.jit, static_argnames=("stride", "padding"))
def conv_with_prelu(x, weight, bias, alpha, *, stride=1, padding=0):
    """Forward pass of _ConvWithPReLU.

    x:      (N, Cin, H, W)      float32, NCHW
    weight: (Cout, Cin, KH, KW) float32 (PyTorch Conv2d layout)
    bias:   (Cout,)             float32
    alpha:  ()                  float32 (PReLU single parameter)
    returns (N, Cout, OH, OW)   float32, NCHW
    """
    if stride == 1:
        return _conv_prelu_fused_s1(x, weight, bias, alpha, padding)
    return _conv_prelu_im2col(x, weight, bias, alpha, stride, padding)


# ---------------------------------------------------------------------------
# Deterministic parameter init (shapes from _ConvWithPReLU.__init__)
# ---------------------------------------------------------------------------
def init_params(key, in_channels, out_channels, kernel_size):
    kw_, kb_ = jax.random.split(key)
    fan_out = out_channels * kernel_size * kernel_size
    gain = 2.0 ** 0.5                              # kaiming_normal_, leaky_relu, a=0
    std = gain / (fan_out ** 0.5)                  # mode='fan_out'
    weight = std * jax.random.normal(
        kw_, (out_channels, in_channels, kernel_size, kernel_size), jnp.float32)
    fan_in = in_channels * kernel_size * kernel_size
    bound = 1.0 / (fan_in ** 0.5)                  # PyTorch default Conv2d bias init
    bias = jax.random.uniform(kb_, (out_channels,), jnp.float32, -bound, bound)
    alpha = jnp.asarray(0.25, jnp.float32)         # nn.PReLU() default
    return weight, bias, alpha


def _reference(x, weight, bias, alpha, stride, padding):
    y = lax.conv_general_dilated(
        x, weight, window_strides=(stride, stride),
        padding=((padding, padding), (padding, padding)),
        dimension_numbers=("NCHW", "OIHW", "NCHW"))
    y = y + bias.reshape(1, -1, 1, 1)
    return jnp.where(y > 0, y, alpha * y)


if __name__ == "__main__":
    key = jax.random.PRNGKey(0)
    k_x, k_p = jax.random.split(key)

    # Small shapes consistent with the module's forward.
    batch, cin, cout, h, w = 2, 4, 8, 16, 16
    ksize, padding = 3, 1

    x = jax.random.normal(k_x, (batch, cin, h, w), jnp.float32)
    weight, bias, alpha = init_params(k_p, cin, cout, ksize)

    # Fused stride-1 path.
    y = conv_with_prelu(x, weight, bias, alpha, stride=1, padding=padding)
    y = jax.block_until_ready(y)
    y_ref = _reference(x, weight, bias, alpha, 1, padding)
    assert y.shape == (batch, cout, h, w), y.shape
    assert jnp.allclose(y, y_ref, atol=1e-4, rtol=1e-4), float(
        jnp.max(jnp.abs(y - y_ref)))

    # Strided fallback path (im2col, unpadded K).
    y2 = conv_with_prelu(x, weight, bias, alpha, stride=2, padding=padding)
    y2 = jax.block_until_ready(y2)
    y2_ref = _reference(x, weight, bias, alpha, 2, padding)
    assert y2.shape == y2_ref.shape, (y2.shape, y2_ref.shape)
    assert jnp.allclose(y2, y2_ref, atol=1e-4, rtol=1e-4), float(
        jnp.max(jnp.abs(y2 - y2_ref)))

    print("KERNEL_OK")
</pallas_src>

<mosaic_0001>
module attributes {stable_mosaic.version = 11 : i64} {
  func.func @kernel(%arg0: i32, %arg1: i32, %arg2: memref<1x288x12xf32, #tpu.memory_space<vmem>>, %arg3: memref<3x12x128xf32, #tpu.memory_space<vmem>>, %arg4: memref<1x128xf32, #tpu.memory_space<vmem>>, %arg5: memref<1x1xf32, #tpu.memory_space<smem>>, %arg6: memref<1x256x128xf32, #tpu.memory_space<vmem>>) attributes {dimension_semantics = [#tpu.dimension_semantics<parallel>, #tpu.dimension_semantics<parallel>], iteration_bounds = array<i64: 2, 1>, scalar_prefetch = 0 : i64, scratch_operands = 0 : i64, tpu.core_type = #tpu.core_type<tc>, window_params = [{transform_indices = @transform_0, window_bounds = array<i64: 1, 288, 12>}, {pipeline_mode = #tpu.pipeline_mode<synchronous>, transform_indices = @transform_1, window_bounds = array<i64: 3, 12, 128>}, {pipeline_mode = #tpu.pipeline_mode<synchronous>, transform_indices = @transform_2, window_bounds = array<i64: 1, 128>}, {transform_indices = @transform_3, window_bounds = array<i64: 1, 1>}, {transform_indices = @transform_4, window_bounds = array<i64: 1, 256, 128>}]} {
    %c256_i32 = arith.constant 256 : i32
    %0 = arith.muli %arg1, %c256_i32 : i32
    %1 = tpu.assume_multiple %0, 8 : i32
    %cst = arith.constant 0.000000e+00 : f32
    %2 = vector.broadcast %cst : f32 to vector<256x128xf32>
    %c0_i32 = arith.constant 0 : i32
    %3 = arith.addi %1, %c0_i32 : i32
    %4 = tpu.assume_multiple %3, 8 : i32
    %c0 = arith.constant 0 : index
    %5 = arith.index_cast %4 : i32 to index
    %c0_0 = arith.constant 0 : index
    %6 = vector.load %arg2[%c0, %5, %c0_0] : memref<1x288x12xf32, #tpu.memory_space<vmem>>, vector<1x256x12xf32>
    %7 = vector.shape_cast %6 : vector<1x256x12xf32> to vector<256x12xf32>
    %c0_1 = arith.constant 0 : index
    %c0_2 = arith.constant 0 : index
    %c0_3 = arith.constant 0 : index
    %8 = vector.load %arg3[%c0_1, %c0_2, %c0_3] : memref<3x12x128xf32, #tpu.memory_space<vmem>>, vector<1x12x128xf32>
    %9 = vector.shape_cast %8 : vector<1x12x128xf32> to vector<12x128xf32>
    %cst_4 = arith.constant dense<0.000000e+00> : vector<256x128xf32>
    %10 = tpu.matmul %7, %9, %cst_4 {dimension_numbers = #tpu.dot_dimension_numbers<[1], [0], [0], [1], [0, 0, 1, 1], [], []>} : vector<256x12xf32>, vector<12x128xf32>, vector<256x128xf32> -> vector<256x128xf32>
    %11 = arith.addf %2, %10 : vector<256x128xf32>
    %c16_i32 = arith.constant 16 : i32
    %12 = arith.addi %1, %c16_i32 : i32
    %13 = tpu.assume_multiple %12, 8 : i32
    %c0_5 = arith.constant 0 : index
    %14 = arith.index_cast %13 : i32 to index
    %c0_6 = arith.constant 0 : index
    %15 = vector.load %arg2[%c0_5, %14, %c0_6] : memref<1x288x12xf32, #tpu.memory_space<vmem>>, vector<1x256x12xf32>
    %16 = vector.shape_cast %15 : vector<1x256x12xf32> to vector<256x12xf32>
    %c1 = arith.constant 1 : index
    %c0_7 = arith.constant 0 : index
    %c0_8 = arith.constant 0 : index
    %17 = vector.load %arg3[%c1, %c0_7, %c0_8] : memref<3x12x128xf32, #tpu.memory_space<vmem>>, vector<1x12x128xf32>
    %18 = vector.shape_cast %17 : vector<1x12x128xf32> to vector<12x128xf32>
    %cst_9 = arith.constant dense<0.000000e+00> : vector<256x128xf32>
    %19 = tpu.matmul %16, %18, %cst_9 {dimension_numbers = #tpu.dot_dimension_numbers<[1], [0], [0], [1], [0, 0, 1, 1], [], []>} : vector<256x12xf32>, vector<12x128xf32>, vector<256x128xf32> -> vector<256x128xf32>
    %20 = arith.addf %11, %19 : vector<256x128xf32>
    %c32_i32 = arith.constant 32 : i32
    %21 = arith.addi %1, %c32_i32 : i32
    %22 = tpu.assume_multiple %21, 8 : i32
    %c0_10 = arith.constant 0 : index
    %23 = arith.index_cast %22 : i32 to index
    %c0_11 = arith.constant 0 : index
    %24 = vector.load %arg2[%c0_10, %23, %c0_11] : memref<1x288x12xf32, #tpu.memory_space<vmem>>, vector<1x256x12xf32>
    %25 = vector.shape_cast %24 : vector<1x256x12xf32> to vector<256x12xf32>
    %c2 = arith.constant 2 : index
    %c0_12 = arith.constant 0 : index
    %c0_13 = arith.constant 0 : index
    %26 = vector.load %arg3[%c2, %c0_12, %c0_13] : memref<3x12x128xf32, #tpu.memory_space<vmem>>, vector<1x12x128xf32>
    %27 = vector.shape_cast %26 : vector<1x12x128xf32> to vector<12x128xf32>
    %cst_14 = arith.constant dense<0.000000e+00> : vector<256x128xf32>
    %28 = tpu.matmul %25, %27, %cst_14 {dimension_numbers = #tpu.dot_dimension_numbers<[1], [0], [0], [1], [0, 0, 1, 1], [], []>} : vector<256x12xf32>, vector<12x128xf32>, vector<256x128xf32> -> vector<256x128xf32>
    %29 = arith.addf %20, %28 : vector<256x128xf32>
    %c0_15 = arith.constant 0 : index
    %c0_16 = arith.constant 0 : index
    %30 = vector.load %arg4[%c0_15, %c0_16] : memref<1x128xf32, #tpu.memory_space<vmem>>, vector<1x128xf32>
    %31 = vector.broadcast %30 : vector<1x128xf32> to vector<256x128xf32>
    %32 = arith.addf %29, %31 : vector<256x128xf32>
    %c0_17 = arith.constant 0 : index
    %c0_18 = arith.constant 0 : index
    %33 = memref.load %arg5[%c0_17, %c0_18] : memref<1x1xf32, #tpu.memory_space<smem>>
    %cst_19 = arith.constant 0.000000e+00 : f32
    %34 = vector.broadcast %cst_19 : f32 to vector<256x128xf32>
    %35 = arith.cmpf ogt, %32, %34 : vector<256x128xf32>
    %36 = vector.broadcast %33 : f32 to vector<256x128xf32>
    %37 = arith.mulf %36, %32 : vector<256x128xf32>
    %38 = arith.select %35, %32, %37 : vector<256x128xi1>, vector<256x128xf32>
    %c0_20 = arith.constant 0 : index
    %c0_21 = arith.constant 0 : index
    %c0_22 = arith.constant 0 : index
    %39 = vector.load %arg6[%c0_20, %c0_21, %c0_22] : memref<1x256x128xf32, #tpu.memory_space<vmem>>, vector<1x256x128xf32>
    %40 = vector.shape_cast %39 : vector<1x256x128xf32> to vector<256x128xf32>
    %41 = vector.shape_cast %38 : vector<256x128xf32> to vector<1x256x128xf32>
    tpu.vector_store %arg6[%c0_20, %c0_21, %c0_22], %41 {strides = array<i32>} : memref<1x256x128xf32, #tpu.memory_space<vmem>>, vector<1x256x128xf32>,
    return
  }
  func.func @transform_0(%arg0: i32, %arg1: i32) -> (i32, i32, i32) {
    %c0_i32 = arith.constant 0 : i32
    %c0_i32_0 = arith.constant 0 : i32
    %c0_i32_1 = arith.constant 0 : i32
    return %arg0, %c0_i32, %c0_i32_0 : i32, i32, i32
  }
  func.func @transform_1(%arg0: i32, %arg1: i32) -> (i32, i32, i32) {
    %c0_i32 = arith.constant 0 : i32
    %c0_i32_0 = arith.constant 0 : i32
    %c0_i32_1 = arith.constant 0 : i32
    %c0_i32_2 = arith.constant 0 : i32
    return %c0_i32, %c0_i32_0, %c0_i32_1 : i32, i32, i32
  }
  func.func @transform_2(%arg0: i32, %arg1: i32) -> (i32, i32) {
    %c0_i32 = arith.constant 0 : i32
    %c0_i32_0 = arith.constant 0 : i32
    %c0_i32_1 = arith.constant 0 : i32
    return %c0_i32, %c0_i32_0 : i32, i32
  }
  func.func @transform_3(%arg0: i32, %arg1: i32) -> (i32, i32) {
    %c0_i32 = arith.constant 0 : i32
    %c0_i32_0 = arith.constant 0 : i32
    %c0_i32_1 = arith.constant 0 : i32
    return %c0_i32, %c0_i32_0 : i32, i32
  }
  func.func @transform_4(%arg0: i32, %arg1: i32) -> (i32, i32, i32) {
    %c0_i32 = arith.constant 0 : i32
    %c0_i32_0 = arith.constant 0 : i32
    return %arg0, %arg1, %c0_i32 : i32, i32, i32
  }
}

</mosaic_0001>

<bundles_post_ra>
// kernel: conv_with_prelu.1
= control target key start
LH: loop header
LB: loop body
LE: loop exit
PB: predicated region body
PF: predicated region fallthrough
CT: control target
= control target key end

     0   :  { %s2196_s17 = smov 0   ;;  %s2198_s18 = smov 0   ;;  %s2534_s0 = inlined_call_operand.vmem [shape: f32[2,288,12], index: 0, kind: input, shape index: {}]   ;;  %s2535_s1 = inlined_call_operand.vmem [shape: f32[3,12,128], index: 1, kind: input, shape index: {}]   ;;  %s2536_s2 = inlined_call_operand.vmem [shape: f32[1,128], index: 2, kind: input, shape index: {}]   ;;  %s2537_s3 = inlined_call_operand.<no memory space> [shape: f32[1,1], index: 3, kind: input, shape index: {}]   ;;  %s2538_s4 = inlined_call_operand.vmem [shape: f32[2,256,128], index: 4, kind: output, shape index: {}]  }
   0x1   :  { %9 = sst [smem:[#allocation2]] %s2537_s3  ;;  %s2200_s19 = smov 0  }
   0x2 LB: > { %s27_s3 = sadd.s32 1, %s2161_s18  ;;  %p1600_p0 = scmp.ge.s32.totalorder %s2165_s19, 1  ;;  %s2165_s19 = sphi %s2200_s19, %s15_s19   ;;  %s2161_s18 = sphi %s2198_s18, %s2542_s18   ;;  %s2157_s17 = sphi %s2196_s17, %s2541_s17  }
   0x3   : > { %p29_p1 = scmp.ge.s32.totalorder %s27_s3, 2  ;;  %p177_p2 = scmp.lt.s32.totalorder %s2165_s19, 3 }
   0x5   : > { %s2544_s3 = smov (%p29_p1, %s27_s3), 0  ;;  %p178_p3 = pnand %p1600_p0, %p177_p2 }
   0x6   : > { %v1636_v0 = vld [vmem:[%s2535_s1 + $0x10] sm:$0xff] (!%p178_p3)  ;;  %v1637_v1 = vld [vmem:[%s2535_s1 + $0x18] sm:$0xf] (!%p178_p3)  ;;  %vm392_vm0 = vcmask (!%p178_p3), 1043456   ;;  %v256_v2 = vld [vmem:[%s2535_s1] sm:$0xff] (!%p178_p3)  ;;  %vm2167_vm1 = vmmov (!%p178_p3), 1  }
   0x7   : > { %181 = sbr.rel (%p178_p3) target bundleno = 333 (0x14d), region = 36  ;;  %v2033_v3 = vpack.c.bf16 (!%p178_p3), %v1637_v1, %v1636_v0  ;;  %vm2223_vm2 = vmpackc.low (!%p178_p3), %vm392_vm0, %vm2167_vm1  ;;  %v257_v5 = vld [vmem:[%s2535_s1 + $0x8] sm:$0xf] (!%p178_p3)  ;;  %p207_p4 = scmp.lt.s32.totalorder (!%p178_p3), %s2157_s17, 1  ;;  %v1736_v6 = vld [vmem:[%s2535_s1 + $0x20] sm:$0xff] (!%p178_p3)  ;;  %vm295_vm3 = vcmask (!%p178_p3), 97280  }
   0x8   : > { %v2039_v7 = vpack.c.bf16 (!%p178_p3), %v257_v5, %v256_v2  ;;  %v1737_v8 = vld [vmem:[%s2535_s1 + $0x28] sm:$0xf] (!%p178_p3)  ;;  %s1377_s10 = sld [smem:[#allocation2]] (!%p178_p3)  ;;  %v2411_v63 = vld [vmem:[%s2536_s2] ss:$0 sm:$0xff] (!%p178_p3) }
   0x9   : > { %2035 = vmatprep.subr.msk.bf16.mxu1 (!%p178_p3), %vm2223_vm2, %v2033_v3  ;;  %v2045_v9 = vpack.c.bf16 (!%p178_p3), %v1737_v8, %v1736_v6 }
   0xa   : > { %2041 = vmatprep.subr.msk.bf16.mxu0 (!%p178_p3), %vm2223_vm2, %v2039_v7  ;;  %2038 = vmatpush3.bf16.msk.msra.mxu1 (!%p178_p3), %vm2223_vm2, %v2033_v3 }
   0xb   : > { %2044 = vmatpush3.bf16.msk.msra.mxu0 (!%p178_p3), %vm2223_vm2, %v2039_v7  ;;  %2051 = vmatprep.subr.msk.bf16.mxu1 (!%p178_p3), %vm2223_vm2, %v2039_v7 }
   0xc   : > { %2047 = vmatprep.subr.msk.bf16.mxu0 (!%p178_p3), %vm2223_vm2, %v2045_v9 }
   0xe   : > { %s2546_s17 = smov (!%p207_p4, %s2157_s17), 1  ;;  %v2414_v2 = vstv %s1377_s10 }
   0xf   : > { %s2117_s6 = smul.u32 288, %s2546_s17  ;;  %s1774_s13 = sshll.u32 %s2546_s17, 8 }
  0x10   : > { %s2421_s16 = scalar_lea.vmem %s2538_s4, %s1774_s13 }
  0x11   : > { %s2254_s9 = scalar_lea.vmem %s2534_s0, %s2117_s6 }
  0x12   : > { %v1604_v10 = vld [vmem:[%s2254_s9 + $0x10] sm:$0xff]  ;;  %v224_v11 = vld [vmem:[%s2254_s9] sm:$0xff]  ;;  %v1605_v12 = vld [vmem:[%s2254_s9 + $0x18] sm:$0xff] }
  0x13   : > { %1881 = vmatprep.mubr.msk.f32.mxu1 %vm295_vm3, %v1604_v10  ;;  %1933 = vmatprep.mubr.msk.f32.mxu0 %vm295_vm3, %v224_v11  ;;  %v225_v13 = vld [vmem:[%s2254_s9 + $0x8] sm:$0xff]  ;;  %v1606_v14 = vld [vmem:[%s2254_s9 + $0x20] sm:$0xff]  ;;  %v1608_v16 = vld [vmem:[%s2254_s9 + $0x30] sm:$0xff] }
  0x14   : > { %1882 = vmatmul.mubr.msk.f32.vlgmr.msra.gmra.mrb[0].mxu1 %vm295_vm3, %v1605_v12  ;;  %1934 = vmatmul.mubr.msk.f32.vlgmr.msra.gmra.mrb[0].mxu0 %vm295_vm3, %v225_v13  ;;  %v1607_v15 = vld [vmem:[%s2254_s9 + $0x28] sm:$0xff]  ;;  %v1609_v17 = vld [vmem:[%s2254_s9 + $0x38] sm:$0xff]  ;;  %v1610_v18 = vld [vmem:[%s2254_s9 + $0x40] sm:$0xff] }
  0x15   : > { %2052 = vmatpush3.bf16.msk.msra.mxu1 %vm2223_vm2, %v2039_v7  ;;  %2050 = vmatpush3.bf16.msk.msra.mxu0 %vm2223_vm2, %v2045_v9  ;;  %v1611_v19 = vld [vmem:[%s2254_s9 + $0x48] sm:$0xff]  ;;  %v1612_v20 = vld [vmem:[%s2254_s9 + $0x50] sm:$0xff]  ;;  %v1613_v21 = vld [vmem:[%s2254_s9 + $0x58] sm:$0xff] }
  0x16   : > { %1884 = vmatprep.mubr.msk.f32.mxu1 %vm295_vm3, %v1606_v14  ;;  %1936 = vmatprep.mubr.msk.f32.mxu0 %vm295_vm3, %v1604_v10  ;;  %v1614_v22 = vld [vmem:[%s2254_s9 + $0x60] sm:$0xff]  ;;  %v1615_v23 = vld [vmem:[%s2254_s9 + $0x68] sm:$0xff]  ;;  %v1616_v24 = vld [vmem:[%s2254_s9 + $0x70] sm:$0xff] }
  0x17   : > { %v1617_v25 = vld [vmem:[%s2254_s9 + $0x78] sm:$0xff]  ;;  %v1618_v26 = vld [vmem:[%s2254_s9 + $0x80] sm:$0xff]  ;;  %v1619_v27 = vld [vmem:[%s2254_s9 + $0x88] sm:$0xff] }
  0x18   : > { %1885 = vmatmul.mubr.msk.f32.gmra.mrb[2].mxu1 %vm295_vm3, %v1607_v15  ;;  %1937 = vmatmul.mubr.msk.f32.gmra.mrb[2].mxu0 %vm295_vm3, %v1605_v12  ;;  %v1620_v28 = vld [vmem:[%s2254_s9 + $0x90] sm:$0xff]  ;;  %v1621_v29 = vld [vmem:[%s2254_s9 + $0x98] sm:$0xff]  ;;  %v1622_v30 = vld [vmem:[%s2254_s9 + $0xa0] sm:$0xff] }
  0x19   : > { %1887 = vmatprep.mubr.msk.f32.mxu1 %vm295_vm3, %v1608_v16  ;;  %1939 = vmatprep.mubr.msk.f32.mxu0 %vm295_vm3, %v1606_v14  ;;  %v1623_v31 = vld [vmem:[%s2254_s9 + $0xa8] sm:$0xff]  ;;  %v1624_v32 = vld [vmem:[%s2254_s9 + $0xb0] sm:$0xff]  ;;  %v1625_v33 = vld [vmem:[%s2254_s9 + $0xb8] sm:$0xff] }
  0x1a   : > { %v1626_v34 = vld [vmem:[%s2254_s9 + $0xc0] sm:$0xff]  ;;  %v1627_v35 = vld [vmem:[%s2254_s9 + $0xc8] sm:$0xff]  ;;  %v1628_v36 = vld [vmem:[%s2254_s9 + $0xd0] sm:$0xff] }
  0x1b   : > { %v1629_v37 = vld [vmem:[%s2254_s9 + $0xd8] sm:$0xff]  ;;  %v1630_v38 = vld [vmem:[%s2254_s9 + $0xe0] sm:$0xff]  ;;  %v1631_v39 = vld [vmem:[%s2254_s9 + $0xe8] sm:$0xff] }
  0x1c   : > { %1888 = vmatmul.mubr.msk.f32.gmra.mrb[4].mxu1 %vm295_vm3, %v1609_v17  ;;  %1940 = vmatmul.mubr.msk.f32.gmra.mrb[4].mxu0 %vm295_vm3, %v1607_v15  ;;  %v1632_v40 = vld [vmem:[%s2254_s9 + $0xf0] sm:$0xff]  ;;  %v1633_v41 = vld [vmem:[%s2254_s9 + $0xf8] sm:$0xff]  ;;  %v1634_v42 = vld [vmem:[%s2254_s9 + $0x100] sm:$0xff] }
  0x1d   : > { %1890 = vmatprep.mubr.msk.f32.mxu1 %vm295_vm3, %v1610_v18  ;;  %1942 = vmatprep.mubr.msk.f32.mxu0 %vm295_vm3, %v1608_v16  ;;  %v1635_v43 = vld [vmem:[%s2254_s9 + $0x108] sm:$0xff]  ;;  %v1734_v44 = vld [vmem:[%s2254_s9 + $0x110] sm:$0xff]  ;;  %v1735_v45 = vld [vmem:[%s2254_s9 + $0x118] sm:$0xff] }
  0x20   : > { %1891 = vmatmul.mubr.msk.f32.gmra.mrb[6].mxu1 %vm295_vm3, %v1611_v19  ;;  %1943 = vmatmul.mubr.msk.f32.gmra.mrb[6].mxu0 %vm295_vm3, %v1609_v17 }
  0x21   : > { %1893 = vmatprep.mubr.msk.f32.mxu1 %vm295_vm3, %v1612_v20  ;;  %1945 = vmatprep.mubr.msk.f32.mxu0 %vm295_vm3, %v1610_v18 }
  0x24   : > { %1894 = vmatmul.mubr.msk.f32.gmra.mrb[8].mxu1 %vm295_vm3, %v1613_v21  ;;  %1946 = vmatmul.mubr.msk.f32.gmra.mrb[8].mxu0 %vm295_vm3, %v1611_v19 }
  0x25   : > { %1896 = vmatprep.mubr.msk.f32.mxu1 %vm295_vm3, %v1614_v22  ;;  %1948 = vmatprep.mubr.msk.f32.mxu0 %vm295_vm3, %v1612_v20 }
  0x28   : > { %1897 = vmatmul.mubr.msk.f32.gmra.mrb[10].mxu1 %vm295_vm3, %v1615_v23  ;;  %1949 = vmatmul.mubr.msk.f32.gmra.mrb[10].mxu0 %vm295_vm3, %v1613_v21 }
  0x29   : > { %1899 = vmatprep.mubr.msk.f32.mxu1 %vm295_vm3, %v1616_v24  ;;  %1951 = vmatprep.mubr.msk.f32.mxu0 %vm295_vm3, %v1614_v22 }
  0x2c   : > { %1900 = vmatmul.mubr.msk.f32.gmra.mrb[12].mxu1 %vm295_vm3, %v1617_v25  ;;  %1952 = vmatmul.mubr.msk.f32.gmra.mrb[12].mxu0 %vm295_vm3, %v1615_v23 }
  0x2d   : > { %1902 = vmatprep.mubr.msk.f32.mxu1 %vm295_vm3, %v1618_v26  ;;  %1954 = vmatprep.mubr.msk.f32.mxu0 %vm295_vm3, %v1616_v24 }
  0x30   : > { %1903 = vmatmul.mubr.msk.f32.gmra.mrb[14].mxu1 %vm295_vm3, %v1619_v27  ;;  %1955 = vmatmul.mubr.msk.f32.gmra.mrb[14].mxu0 %vm295_vm3, %v1617_v25 }
  0x31   : > { %1905 = vmatprep.mubr.msk.f32.mxu1 %vm295_vm3, %v1620_v28  ;;  %1985 = vmatprep.mubr.msk.f32.mxu0 %vm295_vm3, %v1606_v14 }
  0x34   : > { %1906 = vmatmul.mubr.msk.f32.gmra.mrb[16].mxu1 %vm295_vm3, %v1621_v29  ;;  %1986 = vmatmul.mubr.msk.f32.vlgmr.msra.gmra.mrb[0].mxu0 %vm295_vm3, %v1607_v15 }
  0x35   : > { %1908 = vmatprep.mubr.msk.f32.mxu1 %vm295_vm3, %v1622_v30  ;;  %1988 = vmatprep.mubr.msk.f32.mxu0 %vm295_vm3, %v1608_v16 }
  0x38   : > { %1909 = vmatmul.mubr.msk.f32.gmra.mrb[18].mxu1 %vm295_vm3, %v1623_v31  ;;  %1989 = vmatmul.mubr.msk.f32.gmra.mrb[2].mxu0 %vm295_vm3, %v1609_v17 }
  0x39   : > { %1911 = vmatprep.mubr.msk.f32.mxu1 %vm295_vm3, %v1624_v32  ;;  %1991 = vmatprep.mubr.msk.f32.mxu0 %vm295_vm3, %v1610_v18 }
  0x3c   : > { %1912 = vmatmul.mubr.msk.f32.gmra.mrb[20].mxu1 %vm295_vm3, %v1625_v33  ;;  %1992 = vmatmul.mubr.msk.f32.gmra.mrb[4].mxu0 %vm295_vm3, %v1611_v19 }
  0x3d   : > { %1914 = vmatprep.mubr.msk.f32.mxu1 %vm295_vm3, %v1626_v34  ;;  %1994 = vmatprep.mubr.msk.f32.mxu0 %vm295_vm3, %v1612_v20 }
  0x40   : > { %1915 = vmatmul.mubr.msk.f32.gmra.mrb[22].mxu1 %vm295_vm3, %v1627_v35  ;;  %1995 = vmatmul.mubr.msk.f32.gmra.mrb[6].mxu0 %vm295_vm3, %v1613_v21 }
  0x41   : > { %1917 = vmatprep.mubr.msk.f32.mxu1 %vm295_vm3, %v1628_v36  ;;  %1997 = vmatprep.mubr.msk.f32.mxu0 %vm295_vm3, %v1614_v22 }
  0x44   : > { %1918 = vmatmul.mubr.msk.f32.gmra.mrb[24].mxu1 %vm295_vm3, %v1629_v37  ;;  %1998 = vmatmul.mubr.msk.f32.gmra.mrb[8].mxu0 %vm295_vm3, %v1615_v23 }
  0x45   : > { %1920 = vmatprep.mubr.msk.f32.mxu1 %vm295_vm3, %v1630_v38  ;;  %2000 = vmatprep.mubr.msk.f32.mxu0 %vm295_vm3, %v1616_v24 }
  0x48   : > { %1921 = vmatmul.mubr.msk.f32.gmra.mrb[26].mxu1 %vm295_vm3, %v1631_v39  ;;  %2001 = vmatmul.mubr.msk.f32.gmra.mrb[10].mxu0 %vm295_vm3, %v1617_v25 }
  0x49   : > { %1923 = vmatprep.mubr.msk.f32.mxu1 %vm295_vm3, %v1632_v40  ;;  %2003 = vmatprep.mubr.msk.f32.mxu0 %vm295_vm3, %v1618_v26 }
  0x4c   : > { %1924 = vmatmul.mubr.msk.f32.gmra.mrb[28].mxu1 %vm295_vm3, %v1633_v41  ;;  %2004 = vmatmul.mubr.msk.f32.gmra.mrb[12].mxu0 %vm295_vm3, %v1619_v27 }
  0x4d   : > { %1926 = vmatprep.mubr.msk.f32.mxu1 %vm295_vm3, %v1634_v42  ;;  %2006 = vmatprep.mubr.msk.f32.mxu0 %vm295_vm3, %v1620_v28 }
  0x50   : > { %1927 = vmatmul.mubr.msk.f32.gmra.mrb[30].mxu1 %vm295_vm3, %v1635_v43  ;;  %2007 = vmatmul.mubr.msk.f32.gmra.mrb[14].mxu0 %vm295_vm3, %v1621_v29 }
  0x51   : > { %1957 = vmatprep.mubr.msk.f32.mxu1 %vm295_vm3, %v1618_v26  ;;  %2009 = vmatprep.mubr.msk.f32.mxu0 %vm295_vm3, %v1622_v30 }
  0x54   : > { %1958 = vmatmul.mubr.msk.f32.vlgmr.msra.gmra.mrb[16].mxu1 %vm295_vm3, %v1619_v27  ;;  %2010 = vmatmul.mubr.msk.f32.gmra.mrb[16].mxu0 %vm295_vm3, %v1623_v31 }
  0x55   : > { %1960 = vmatprep.mubr.msk.f32.mxu1 %vm295_vm3, %v1620_v28  ;;  %2012 = vmatprep.mubr.msk.f32.mxu0 %vm295_vm3, %v1624_v32 }
  0x58   : > { %1961 = vmatmul.mubr.msk.f32.gmra.mrb[18].mxu1 %vm295_vm3, %v1621_v29  ;;  %2013 = vmatmul.mubr.msk.f32.gmra.mrb[18].mxu0 %vm295_vm3, %v1625_v33 }
  0x59   : > { %1963 = vmatprep.mubr.msk.f32.mxu1 %vm295_vm3, %v1622_v30  ;;  %2015 = vmatprep.mubr.msk.f32.mxu0 %vm295_vm3, %v1626_v34 }
  0x5c   : > { %1964 = vmatmul.mubr.msk.f32.gmra.mrb[20].mxu1 %vm295_vm3, %v1623_v31  ;;  %2016 = vmatmul.mubr.msk.f32.gmra.mrb[20].mxu0 %vm295_vm3, %v1627_v35 }
  0x5d   : > { %1966 = vmatprep.mubr.msk.f32.mxu1 %vm295_vm3, %v1624_v32  ;;  %2018 = vmatprep.mubr.msk.f32.mxu0 %vm295_vm3, %v1628_v36 }
  0x60   : > { %1967 = vmatmul.mubr.msk.f32.gmra.mrb[22].mxu1 %vm295_vm3, %v1625_v33  ;;  %2019 = vmatmul.mubr.msk.f32.gmra.mrb[22].mxu0 %vm295_vm3, %v1629_v37 }
  0x61   : > { %1969 = vmatprep.mubr.msk.f32.mxu1 %vm295_vm3, %v1626_v34  ;;  %2021 = vmatprep.mubr.msk.f32.mxu0 %vm295_vm3, %v1630_v38 }
  0x64   : > { %1970 = vmatmul.mubr.msk.f32.gmra.mrb[24].mxu1 %vm295_vm3, %v1627_v35  ;;  %2022 = vmatmul.mubr.msk.f32.gmra.mrb[24].mxu0 %vm295_vm3, %v1631_v39 }
  0x65   : > { %1972 = vmatprep.mubr.msk.f32.mxu1 %vm295_vm3, %v1628_v36  ;;  %2024 = vmatprep.mubr.msk.f32.mxu0 %vm295_vm3, %v1632_v40 }
  0x68   : > { %1973 = vmatmul.mubr.msk.f32.gmra.mrb[26].mxu1 %vm295_vm3, %v1629_v37  ;;  %2025 = vmatmul.mubr.msk.f32.gmra.mrb[26].mxu0 %vm295_vm3, %v1633_v41 }
  0x69   : > { %1975 = vmatprep.mubr.msk.f32.mxu1 %vm295_vm3, %v1630_v38  ;;  %2027 = vmatprep.mubr.msk.f32.mxu0 %vm295_vm3, %v1634_v42 }
  0x6c   : > { %1976 = vmatmul.mubr.msk.f32.gmra.mrb[28].mxu1 %vm295_vm3, %v1631_v39  ;;  %2028 = vmatmul.mubr.msk.f32.gmra.mrb[28].mxu0 %vm295_vm3, %v1635_v43 }
  0x6d   : > { %1978 = vmatprep.mubr.msk.f32.mxu1 %vm295_vm3, %v1632_v40  ;;  %2030 = vmatprep.mubr.msk.f32.mxu0 %vm295_vm3, %v1734_v44 }
  0x70   : > { %1979 = vmatmul.mubr.msk.f32.gmra.mrb[30].mxu1 %vm295_vm3, %v1633_v41  ;;  %2031 = vmatmul.mubr.msk.f32.gmra.mrb[30].mxu0 %vm295_vm3, %v1735_v45 }
  0xe7   : > { %v1883_v46 = vpop.f32.mrb[0].mxu1 }
  0xe8   : > { %v462_v47 = vpop.f32.mrb[1].mxu1 }
  0xeb   : > { %v1886_v48 = vpop.f32.mrb[2].mxu1 }
  0xec   : > { %v472_v49 = vpop.f32.mrb[3].mxu1 }
  0xef   : > { %v1889_v50 = vpop.f32.mrb[4].mxu1 }
  0xf0   : > { %v482_v51 = vpop.f32.mrb[5].mxu1 }
  0xf3   : > { %v1892_v52 = vpop.f32.mrb[6].mxu1 }
  0xf4   : > { %v492_v53 = vpop.f32.mrb[7].mxu1 }
  0xf7   : > { %v2392_v54 = vpop.f32.mrb[8].mxu1 }
  0xf8   : > { %v2394_v55 = vpop.f32.mrb[9].mxu1 }
  0xfb   : > { %v2396_v56 = vpop.f32.mrb[10].mxu1 }
  0xfc   : > { %v2398_v57 = vpop.f32.mrb[11].mxu1 }
  0xff   : > { %v2400_v58 = vpop.f32.mrb[12].mxu1 }
 0x100   : > { %v2402_v59 = vpop.f32.mrb[13].mxu1 }
 0x103   : > { %v2404_v60 = vpop.f32.mrb[14].mxu1 }
 0x104   : > { %v2406_v61 = vpop.f32.mrb[15].mxu1 }
 0x107   : > { %v1987_v62 = vpop.f32.mrb[0].mxu0 }
 0x108   : > { %v2053_v0 = vadd.f32 %v1987_v62, %v1883_v46  ;;  %v1147_v1 = vpop.f32.mrb[1].mxu0 }
 0x109   : > { %v2054_v3 = vadd.f32 %v1147_v1, %v462_v47 }
 0x10a   : > { %v1346_v4 = vadd.f32 %v2053_v0, %v2411_v63 }
 0x10b   : > { %v1345_v5 = vadd.f32 %v2054_v3, %v2411_v63  ;;  %v1990_v6 = vpop.f32.mrb[2].mxu0 }
 0x10c   : > { %vm1379_vm4 = vcmp.gt.f32.partialorder %v1346_v4, 0.0  ;;  %v1412_v7 = vmul.f32 %v2414_v2, %v1346_v4  ;;  %v2055_v8 = vadd.f32 %v1990_v6, %v1886_v48  ;;  %v1157_v9 = vpop.f32.mrb[3].mxu0 }
 0x10d   : > { %vm1378_vm5 = vcmp.gt.f32.partialorder %v1345_v5, 0.0  ;;  %v1411_v10 = vmul.f32 %v2414_v2, %v1345_v5  ;;  %v2056_v11 = vadd.f32 %v1157_v9, %v472_v49 }
 0x10e   : > { %v1444_v12 = vsel %vm1379_vm4, %v1346_v4, %v1412_v7  ;;  %v1348_v13 = vadd.f32 %v2055_v8, %v2411_v63 }
 0x10f   : > { %1476 = vst [vmem:[%s2421_s16 + $0x8] sm:$0xff] %v1444_v12  ;;  %v1443_v14 = vsel %vm1378_vm5, %v1345_v5, %v1411_v10  ;;  %v1347_v15 = vadd.f32 %v2056_v11, %v2411_v63  ;;  %v1993_v16 = vpop.f32.mrb[4].mxu0 }
 0x110   : > { %1475 = vst [vmem:[%s2421_s16] sm:$0xff] %v1443_v14  ;;  %vm1381_vm6 = vcmp.gt.f32.partialorder %v1348_v13, 0.0  ;;  %v1414_v17 = vmul.f32 %v2414_v2, %v1348_v13  ;;  %v2057_v18 = vadd.f32 %v1993_v16, %v1889_v50  ;;  %v1167_v19 = vpop.f32.mrb[5].mxu0 }
 0x111   : > { %vm1380_vm7 = vcmp.gt.f32.partialorder %v1347_v15, 0.0  ;;  %v1413_v20 = vmul.f32 %v2414_v2, %v1347_v15  ;;  %v2058_v21 = vadd.f32 %v1167_v19, %v482_v51 }
 0x112   : > { %v1446_v22 = vsel %vm1381_vm6, %v1348_v13, %v1414_v17  ;;  %v1350_v23 = vadd.f32 %v2057_v18, %v2411_v63 }
 0x113   : > { %1478 = vst [vmem:[%s2421_s16 + $0x18] sm:$0xff] %v1446_v22  ;;  %v1445_v24 = vsel %vm1380_vm7, %v1347_v15, %v1413_v20  ;;  %v1349_v25 = vadd.f32 %v2058_v21, %v2411_v63  ;;  %v1996_v26 = vpop.f32.mrb[6].mxu0 }
 0x114   : > { %1477 = vst [vmem:[%s2421_s16 + $0x10] sm:$0xff] %v1445_v24  ;;  %vm1383_vm8 = vcmp.gt.f32.partialorder %v1350_v23, 0.0  ;;  %v1416_v27 = vmul.f32 %v2414_v2, %v1350_v23  ;;  %v2059_v28 = vadd.f32 %v1996_v26, %v1892_v52  ;;  %v1177_v29 = vpop.f32.mrb[7].mxu0 }
 0x115   : > { %vm1382_vm9 = vcmp.gt.f32.partialorder %v1349_v25, 0.0  ;;  %v1415_v30 = vmul.f32 %v2414_v2, %v1349_v25  ;;  %v2060_v31 = vadd.f32 %v1177_v29, %v492_v53 }
 0x116   : > { %v1448_v32 = vsel %vm1383_vm8, %v1350_v23, %v1416_v27  ;;  %v1352_v33 = vadd.f32 %v2059_v28, %v2411_v63 }
 0x117   : > { %1480 = vst [vmem:[%s2421_s16 + $0x28] sm:$0xff] %v1448_v32  ;;  %v1447_v34 = vsel %vm1382_vm9, %v1349_v25, %v1415_v30  ;;  %v1351_v35 = vadd.f32 %v2060_v31, %v2411_v63  ;;  %v1999_v36 = vpop.f32.mrb[8].mxu0 }
 0x118   : > { %1479 = vst [vmem:[%s2421_s16 + $0x20] sm:$0xff] %v1447_v34  ;;  %vm1385_vm10 = vcmp.gt.f32.partialorder %v1352_v33, 0.0  ;;  %v1418_v37 = vmul.f32 %v2414_v2, %v1352_v33  ;;  %v2061_v38 = vadd.f32 %v1999_v36, %v2392_v54  ;;  %v1187_v39 = vpop.f32.mrb[9].mxu0 }
 0x119   : > { %vm1384_vm11 = vcmp.gt.f32.partialorder %v1351_v35, 0.0  ;;  %v1417_v40 = vmul.f32 %v2414_v2, %v1351_v35  ;;  %v2062_v41 = vadd.f32 %v1187_v39, %v2394_v55 }
 0x11a   : > { %v1450_v42 = vsel %vm1385_vm10, %v1352_v33, %v1418_v37  ;;  %v1354_v43 = vadd.f32 %v2061_v38, %v2411_v63 }
 0x11b   : > { %1482 = vst [vmem:[%s2421_s16 + $0x38] sm:$0xff] %v1450_v42  ;;  %v1449_v44 = vsel %vm1384_vm11, %v1351_v35, %v1417_v40  ;;  %v1353_v45 = vadd.f32 %v2062_v41, %v2411_v63  ;;  %v2002_v46 = vpop.f32.mrb[10].mxu0 }
 0x11c   : > { %1481 = vst [vmem:[%s2421_s16 + $0x30] sm:$0xff] %v1449_v44  ;;  %vm1387_vm12 = vcmp.gt.f32.partialorder %v1354_v43, 0.0  ;;  %v1420_v47 = vmul.f32 %v2414_v2, %v1354_v43  ;;  %v2063_v48 = vadd.f32 %v2002_v46, %v2396_v56  ;;  %v1197_v49 = vpop.f32.mrb[11].mxu0 }
 0x11d   : > { %vm1386_vm13 = vcmp.gt.f32.partialorder %v1353_v45, 0.0  ;;  %v1419_v50 = vmul.f32 %v2414_v2, %v1353_v45  ;;  %v2064_v51 = vadd.f32 %v1197_v49, %v2398_v57 }
 0x11e   : > { %v1452_v52 = vsel %vm1387_vm12, %v1354_v43, %v1420_v47  ;;  %v1356_v53 = vadd.f32 %v2063_v48, %v2411_v63 }
 0x11f   : > { %1484 = vst [vmem:[%s2421_s16 + $0x48] sm:$0xff] %v1452_v52  ;;  %v1451_v54 = vsel %vm1386_vm13, %v1353_v45, %v1419_v50  ;;  %v1355_v55 = vadd.f32 %v2064_v51, %v2411_v63  ;;  %v2005_v62 = vpop.f32.mrb[12].mxu0 }
 0x120   : > { %1483 = vst [vmem:[%s2421_s16 + $0x40] sm:$0xff] %v1451_v54  ;;  %vm1389_vm14 = vcmp.gt.f32.partialorder %v1356_v53, 0.0  ;;  %v1422_v56 = vmul.f32 %v2414_v2, %v1356_v53  ;;  %v2065_v0 = vadd.f32 %v2005_v62, %v2400_v58  ;;  %v1207_v1 = vpop.f32.mrb[13].mxu0 }
 0x121   : > { %vm1388_vm15 = vcmp.gt.f32.partialorder %v1355_v55, 0.0  ;;  %v1421_v57 = vmul.f32 %v2414_v2, %v1355_v55  ;;  %v2066_v3 = vadd.f32 %v1207_v1, %v2402_v59 }
 0x122   : > { %v1454_v4 = vsel %vm1389_vm14, %v1356_v53, %v1422_v56  ;;  %v1358_v5 = vadd.f32 %v2065_v0, %v2411_v63 }
 0x123   : > { %1486 = vst [vmem:[%s2421_s16 + $0x58] sm:$0xff] %v1454_v4  ;;  %v1453_v6 = vsel %vm1388_vm15, %v1355_v55, %v1421_v57  ;;  %v1357_v7 = vadd.f32 %v2066_v3, %v2411_v63  ;;  %v2008_v8 = vpop.f32.mrb[14].mxu0 }
 0x124   : > { %1485 = vst [vmem:[%s2421_s16 + $0x50] sm:$0xff] %v1453_v6  ;;  %vm1391_vm0 = vcmp.gt.f32.partialorder %v1358_v5, 0.0  ;;  %v1424_v58 = vmul.f32 %v2414_v2, %v1358_v5  ;;  %v2067_v9 = vadd.f32 %v2008_v8, %v2404_v60  ;;  %v1217_v10 = vpop.f32.mrb[15].mxu0 }
 0x125   : > { %vm1390_vm1 = vcmp.gt.f32.partialorder %v1357_v7, 0.0  ;;  %v1423_v59 = vmul.f32 %v2414_v2, %v1357_v7  ;;  %v2068_v11 = vadd.f32 %v1217_v10, %v2406_v61 }
 0x126   : > { %v1456_v12 = vsel %vm1391_vm0, %v1358_v5, %v1424_v58  ;;  %v1360_v13 = vadd.f32 %v2067_v9, %v2411_v63 }
 0x127   : > { %1488 = vst [vmem:[%s2421_s16 + $0x68] sm:$0xff] %v1456_v12  ;;  %v1455_v14 = vsel %vm1390_vm1, %v1357_v7, %v1423_v59  ;;  %v1359_v15 = vadd.f32 %v2068_v11, %v2411_v63  ;;  %v1959_v16 = vpop.f32.mrb[16].mxu1  ;;  %v2011_v17 = vpop.f32.mrb[16].mxu0 }
 0x128   : > { %1487 = vst [vmem:[%s2421_s16 + $0x60] sm:$0xff] %v1455_v14  ;;  %vm1393_vm2 = vcmp.gt.f32.partialorder %v1360_v13, 0.0  ;;  %v1426_v60 = vmul.f32 %v2414_v2, %v1360_v13  ;;  %v2069_v18 = vadd.f32 %v2011_v17, %v1959_v16  ;;  %v866_v19 = vpop.f32.mrb[17].mxu1  ;;  %v1227_v20 = vpop.f32.mrb[17].mxu0 }
 0x129   : > { %vm1392_vm3 = vcmp.gt.f32.partialorder %v1359_v15, 0.0  ;;  %v1425_v61 = vmul.f32 %v2414_v2, %v1359_v15  ;;  %v2070_v21 = vadd.f32 %v1227_v20, %v866_v19 }
 0x12a   : > { %v1458_v22 = vsel %vm1393_vm2, %v1360_v13, %v1426_v60  ;;  %v1362_v23 = vadd.f32 %v2069_v18, %v2411_v63 }
 0x12b   : > { %1490 = vst [vmem:[%s2421_s16 + $0x78] sm:$0xff] %v1458_v22  ;;  %v1457_v24 = vsel %vm1392_vm3, %v1359_v15, %v1425_v61  ;;  %v1361_v25 = vadd.f32 %v2070_v21, %v2411_v63  ;;  %v1962_v26 = vpop.f32.mrb[18].mxu1  ;;  %v2014_v27 = vpop.f32.mrb[18].mxu0 }
 0x12c   : > { %1489 = vst [vmem:[%s2421_s16 + $0x70] sm:$0xff] %v1457_v24  ;;  %vm1395_vm4 = vcmp.gt.f32.partialorder %v1362_v23, 0.0  ;;  %v1428_v28 = vmul.f32 %v2414_v2, %v1362_v23  ;;  %v2071_v29 = vadd.f32 %v2014_v27, %v1962_v26  ;;  %v876_v30 = vpop.f32.mrb[19].mxu1  ;;  %v1237_v31 = vpop.f32.mrb[19].mxu0 }
 0x12d   : > { %vm1394_vm5 = vcmp.gt.f32.partialorder %v1361_v25, 0.0  ;;  %v1427_v32 = vmul.f32 %v2414_v2, %v1361_v25  ;;  %v2072_v33 = vadd.f32 %v1237_v31, %v876_v30 }
 0x12e   : > { %v1460_v34 = vsel %vm1395_vm4, %v1362_v23, %v1428_v28  ;;  %v1364_v35 = vadd.f32 %v2071_v29, %v2411_v63 }
 0x12f   : > { %1492 = vst [vmem:[%s2421_s16 + $0x88] sm:$0xff] %v1460_v34  ;;  %v1459_v36 = vsel %vm1394_vm5, %v1361_v25, %v1427_v32  ;;  %v1363_v37 = vadd.f32 %v2072_v33, %v2411_v63  ;;  %v1965_v38 = vpop.f32.mrb[20].mxu1  ;;  %v2017_v39 = vpop.f32.mrb[20].mxu0 }
 0x130   : > { %1491 = vst [vmem:[%s2421_s16 + $0x80] sm:$0xff] %v1459_v36  ;;  %vm1397_vm6 = vcmp.gt.f32.partialorder %v1364_v35, 0.0  ;;  %v1430_v40 = vmul.f32 %v2414_v2, %v1364_v35  ;;  %v2073_v41 = vadd.f32 %v2017_v39, %v1965_v38  ;;  %v886_v42 = vpop.f32.mrb[21].mxu1  ;;  %v1247_v43 = vpop.f32.mrb[21].mxu0 }
 0x131   : > { %vm1396_vm7 = vcmp.gt.f32.partialorder %v1363_v37, 0.0  ;;  %v1429_v44 = vmul.f32 %v2414_v2, %v1363_v37  ;;  %v2074_v45 = vadd.f32 %v1247_v43, %v886_v42 }
 0x132   : > { %v1462_v46 = vsel %vm1397_vm6, %v1364_v35, %v1430_v40  ;;  %v1366_v47 = vadd.f32 %v2073_v41, %v2411_v63 }
 0x133   : > { %1494 = vst [vmem:[%s2421_s16 + $0x98] sm:$0xff] %v1462_v46  ;;  %v1461_v48 = vsel %vm1396_vm7, %v1363_v37, %v1429_v44  ;;  %v1365_v49 = vadd.f32 %v2074_v45, %v2411_v63  ;;  %v1968_v50 = vpop.f32.mrb[22].mxu1  ;;  %v2020_v51 = vpop.f32.mrb[22].mxu0 }
 0x134   : > { %1493 = vst [vmem:[%s2421_s16 + $0x90] sm:$0xff] %v1461_v48  ;;  %vm1399_vm8 = vcmp.gt.f32.partialorder %v1366_v47, 0.0  ;;  %v1432_v52 = vmul.f32 %v2414_v2, %v1366_v47  ;;  %v2075_v53 = vadd.f32 %v2020_v51, %v1968_v50  ;;  %v896_v54 = vpop.f32.mrb[23].mxu1  ;;  %v1257_v55 = vpop.f32.mrb[23].mxu0 }
 0x135   : > { %vm1398_vm9 = vcmp.gt.f32.partialorder %v1365_v49, 0.0  ;;  %v1431_v62 = vmul.f32 %v2414_v2, %v1365_v49  ;;  %v2076_v56 = vadd.f32 %v1257_v55, %v896_v54 }
 0x136   : > { %v1464_v0 = vsel %vm1399_vm8, %v1366_v47, %v1432_v52  ;;  %v1368_v1 = vadd.f32 %v2075_v53, %v2411_v63 }
 0x137   : > { %1496 = vst [vmem:[%s2421_s16 + $0xa8] sm:$0xff] %v1464_v0  ;;  %v1463_v57 = vsel %vm1398_vm9, %v1365_v49, %v1431_v62  ;;  %v1367_v3 = vadd.f32 %v2076_v56, %v2411_v63  ;;  %v1971_v4 = vpop.f32.mrb[24].mxu1  ;;  %v2023_v5 = vpop.f32.mrb[24].mxu0 }
 0x138   : > { %1495 = vst [vmem:[%s2421_s16 + $0xa0] sm:$0xff] %v1463_v57  ;;  %vm1401_vm10 = vcmp.gt.f32.partialorder %v1368_v1, 0.0  ;;  %v1434_v6 = vmul.f32 %v2414_v2, %v1368_v1  ;;  %v2077_v7 = vadd.f32 %v2023_v5, %v1971_v4  ;;  %v906_v8 = vpop.f32.mrb[25].mxu1  ;;  %v1267_v58 = vpop.f32.mrb[25].mxu0 }
 0x139   : > { %vm1400_vm11 = vcmp.gt.f32.partialorder %v1367_v3, 0.0  ;;  %v1433_v9 = vmul.f32 %v2414_v2, %v1367_v3  ;;  %v2078_v10 = vadd.f32 %v1267_v58, %v906_v8 }
 0x13a   : > { %v1466_v59 = vsel %vm1401_vm10, %v1368_v1, %v1434_v6  ;;  %v1370_v11 = vadd.f32 %v2077_v7, %v2411_v63 }
 0x13b   : > { %1498 = vst [vmem:[%s2421_s16 + $0xb8] sm:$0xff] %v1466_v59  ;;  %v1465_v12 = vsel %vm1400_vm11, %v1367_v3, %v1433_v9  ;;  %v1369_v13 = vadd.f32 %v2078_v10, %v2411_v63  ;;  %v1974_v14 = vpop.f32.mrb[26].mxu1  ;;  %v2026_v15 = vpop.f32.mrb[26].mxu0 }
 0x13c   : > { %1497 = vst [vmem:[%s2421_s16 + $0xb0] sm:$0xff] %v1465_v12  ;;  %vm1403_vm12 = vcmp.gt.f32.partialorder %v1370_v11, 0.0  ;;  %v1436_v16 = vmul.f32 %v2414_v2, %v1370_v11  ;;  %v2079_v17 = vadd.f32 %v2026_v15, %v1974_v14  ;;  %v916_v60 = vpop.f32.mrb[27].mxu1  ;;  %v1277_v18 = vpop.f32.mrb[27].mxu0 }
 0x13d   : > { %vm1402_vm13 = vcmp.gt.f32.partialorder %v1369_v13, 0.0  ;;  %v1435_v19 = vmul.f32 %v2414_v2, %v1369_v13  ;;  %v2080_v20 = vadd.f32 %v1277_v18, %v916_v60 }
 0x13e   : > { %v1468_v61 = vsel %vm1403_vm12, %v1370_v11, %v1436_v16  ;;  %v1372_v21 = vadd.f32 %v2079_v17, %v2411_v63 }
 0x13f   : > { %1500 = vst [vmem:[%s2421_s16 + $0xc8] sm:$0xff] %v1468_v61  ;;  %v1467_v22 = vsel %vm1402_vm13, %v1369_v13, %v1435_v19  ;;  %v1371_v23 = vadd.f32 %v2080_v20, %v2411_v63  ;;  %v1977_v24 = vpop.f32.mrb[28].mxu1  ;;  %v2029_v25 = vpop.f32.mrb[28].mxu0 }
 0x140   : > { %1499 = vst [vmem:[%s2421_s16 + $0xc0] sm:$0xff] %v1467_v22  ;;  %vm1405_vm14 = vcmp.gt.f32.partialorder %v1372_v21, 0.0  ;;  %v1438_v26 = vmul.f32 %v2414_v2, %v1372_v21  ;;  %v2081_v27 = vadd.f32 %v2029_v25, %v1977_v24  ;;  %v926_v28 = vpop.f32.mrb[29].mxu1  ;;  %v1287_v29 = vpop.f32.mrb[29].mxu0 }
 0x141   : > { %vm1404_vm15 = vcmp.gt.f32.partialorder %v1371_v23, 0.0  ;;  %v1437_v30 = vmul.f32 %v2414_v2, %v1371_v23  ;;  %v2082_v31 = vadd.f32 %v1287_v29, %v926_v28 }
 0x142   : > { %v1470_v32 = vsel %vm1405_vm14, %v1372_v21, %v1438_v26  ;;  %v1374_v33 = vadd.f32 %v2081_v27, %v2411_v63 }
 0x143   : > { %1502 = vst [vmem:[%s2421_s16 + $0xd8] sm:$0xff] %v1470_v32  ;;  %v1469_v34 = vsel %vm1404_vm15, %v1371_v23, %v1437_v30  ;;  %v1373_v35 = vadd.f32 %v2082_v31, %v2411_v63  ;;  %v1980_v36 = vpop.f32.mrb[30].mxu1  ;;  %v2032_v37 = vpop.f32.mrb[30].mxu0 }
 0x144   : > { %1501 = vst [vmem:[%s2421_s16 + $0xd0] sm:$0xff] %v1469_v34  ;;  %vm1407_vm0 = vcmp.gt.f32.partialorder %v1374_v33, 0.0  ;;  %v1440_v38 = vmul.f32 %v2414_v2, %v1374_v33  ;;  %v2083_v39 = vadd.f32 %v2032_v37, %v1980_v36  ;;  %v936_v40 = vpop.f32.mrb[31].mxu1  ;;  %v1297_v41 = vpop.f32.mrb[31].mxu0 }
 0x145   : > { %vm1406_vm1 = vcmp.gt.f32.partialorder %v1373_v35, 0.0  ;;  %v1439_v42 = vmul.f32 %v2414_v2, %v1373_v35  ;;  %v2084_v43 = vadd.f32 %v1297_v41, %v936_v40 }
 0x146   : > { %v1472_v44 = vsel %vm1407_vm0, %v1374_v33, %v1440_v38  ;;  %v1376_v45 = vadd.f32 %v2083_v39, %v2411_v63 }
 0x147   : > { %1504 = vst [vmem:[%s2421_s16 + $0xe8] sm:$0xff] %v1472_v44  ;;  %v1471_v46 = vsel %vm1406_vm1, %v1373_v35, %v1439_v42  ;;  %v1375_v47 = vadd.f32 %v2084_v43, %v2411_v63 }
 0x148   : > { %1503 = vst [vmem:[%s2421_s16 + $0xe0] sm:$0xff] %v1471_v46  ;;  %vm1409_vm2 = vcmp.gt.f32.partialorder %v1376_v45, 0.0  ;;  %v1442_v48 = vmul.f32 %v2414_v2, %v1376_v45 }
 0x149   : > { %vm1408_vm3 = vcmp.gt.f32.partialorder %v1375_v47, 0.0  ;;  %v1441_v49 = vmul.f32 %v2414_v2, %v1375_v47 }
 0x14a   : > { %v1474_v50 = vsel %vm1409_vm2, %v1376_v45, %v1442_v48 }
 0x14b   : > { %1506 = vst [vmem:[%s2421_s16 + $0xf8] sm:$0xff] %v1474_v50  ;;  %v1473_v51 = vsel %vm1408_vm3, %v1375_v47, %v1441_v49 }
 0x14c   : > { %1505 = vst [vmem:[%s2421_s16 + $0xf0] sm:$0xff] %v1473_v51 }
 0x14d PF: > { %s15_s19 = sadd.s32 1, %s2165_s19   ;;  %s2541_s17 = smov %s2161_s18 }
 0x14e   : > { %p12_p5 = scmp.ge.s32.totalorder %s15_s19, 4   ;;  %s2542_s18 = smov %s2544_s3 }
 0x150   :  { %14 = sbr.rel (!%p12_p5) target bundleno = 2 (0x2), region = 71 }

</bundles_post_ra>
